<compile_context>
chip_gen: v6e
topology: v6e:2x2x1
jax: 0.10.0
libtpu: 0.0.40
codegen_flags: <defaults>
</compile_context>

<pallas_src>
import functools

import jax
import jax.numpy as jnp
from jax.experimental import pallas as pl
from jax.experimental.pallas import tpu as pltpu

_LANE = 128     # lane width (last dim)
_SUBLANE = 8    # f32 sublane count (second-to-last dim)


def _round_up(x, m):
    return ((x + m - 1) // m) * m


def _mlp_kernel(x_ref, *refs):
    """Fused MLP.

    x_ref : (Bp, F0p) f32 activations (zero-padded).
    refs  : (w0_ref, ..., w_{L-1}_ref, o_ref); each w_i is (F_in_p, F_out_p)
            bf16, pre-transposed and zero-padded; o_ref is (Bp, Cp) f32.

    Intermediate activations never leave vregs/VMEM; only the final layer's
    result is stored.
    """
    *w_refs, o_ref = refs
    n = len(w_refs)
    h = x_ref[...]                                   # f32
    for i, w_ref in enumerate(w_refs):
        h = jnp.dot(h.astype(w_ref.dtype), w_ref[...],
                    preferred_element_type=jnp.float32)
        if i < n - 1:
            h = jnp.maximum(h, 0.0)
    o_ref[...] = h.astype(o_ref.dtype)


def _fused_mlp(x_pad, weights_pad):
    """x_pad: (Bp, F0p) f32; weights_pad: tuple of (F_in_p, F_out_p) bf16."""
    Bp = x_pad.shape[0]
    Cp = weights_pad[-1].shape[1]
    n_in = 1 + len(weights_pad)
    return pl.pallas_call(
        _mlp_kernel,
        out_shape=jax.ShapeDtypeStruct((Bp, Cp), jnp.float32),
        in_specs=[pl.BlockSpec(memory_space=pltpu.MemorySpace.VMEM)] * n_in,
        out_specs=pl.BlockSpec(memory_space=pltpu.MemorySpace.VMEM),
    )(x_pad, *weights_pad)


class NetPallas:
    """Mirror of the PyTorch Net: units = [dim] + units + [c], bias-free
    Linears, ReLU after every layer except the last."""

    def __init__(self, dim, c, units, key, weight_dtype=jnp.bfloat16):
        self.units = [dim] + list(units) + [c]
        self.c = c
        self.weights_t = []    # logical (in, out) weights, weight_dtype
        weights_pad = []       # zero-padded to lane/sublane-dense shapes
        for i in range(len(self.units) - 1):
            fan_in, fan_out = self.units[i], self.units[i + 1]
            key, sub = jax.random.split(key)
            # Deterministic init, roughly kaiming-uniform like nn.Linear default.
            bound = 1.0 / jnp.sqrt(jnp.float32(fan_in))
            w = jax.random.uniform(sub, (fan_out, fan_in), jnp.float32,
                                   -bound, bound)
            w_t = jnp.transpose(w).astype(weight_dtype)          # (in, out)
            self.weights_t.append(w_t)
            fi_p = _round_up(fan_in, _LANE)
            fo_p = _round_up(fan_out, _LANE)
            w_p = jnp.zeros((fi_p, fo_p), weight_dtype)
            w_p = w_p.at[:fan_in, :fan_out].set(w_t)
            weights_pad.append(w_p)
        self.weights_pad = tuple(weights_pad)
        self._fwd = jax.jit(self._forward)

    def _forward(self, x, weights_pad):
        B = x.shape[0]
        x = x.reshape(B, -1).astype(jnp.float32)                 # x.view(B, -1)
        F0 = x.shape[1]
        Bp = _round_up(max(B, _SUBLANE), _SUBLANE)
        F0p = weights_pad[0].shape[0]
        x_pad = jnp.zeros((Bp, F0p), jnp.float32).at[:B, :F0].set(x)
        y_pad = _fused_mlp(x_pad, weights_pad)
        return y_pad[:B, :self.c]

    def __call__(self, x):
        return self._fwd(x, self.weights_pad)


if __name__ == "__main__":
    key = jax.random.PRNGKey(0)
    k_in, k_net = jax.random.split(key)

    # Small shapes consistent with the module: dim=32, hidden units=[64, 48], c=16.
    B, dim, c = 2, 32, 16
    units = [64, 48]

    x = jax.random.normal(k_in, (B, dim), jnp.float32)

    net = NetPallas(dim, c, units, k_net)
    out = jax.block_until_ready(net(x))

    # Pure-JAX reference using the same bf16-weight / f32-accumulate math.
    ref = x.reshape(B, -1).astype(jnp.float32)
    n_layers = len(net.weights_t)
    for i, w_t in enumerate(net.weights_t):
        ref = jnp.dot(ref.astype(w_t.dtype), w_t,
                      preferred_element_type=jnp.float32)
        if i < n_layers - 1:
            ref = jnp.maximum(ref, 0.0)
    ref = jax.block_until_ready(ref)

    assert out.shape == (B, c)
    max_err = float(jnp.max(jnp.abs(out - ref)))
    assert jnp.allclose(out, ref, atol=1e-3, rtol=1e-3), max_err

    print("KERNEL_OK")
</pallas_src>

<mosaic_0001>
module attributes {stable_mosaic.version = 11 : i64} {
  func.func @_mlp_kernel(%arg0: memref<8x128xf32, #tpu.memory_space<vmem>>, %arg1: memref<128x128xbf16, #tpu.memory_space<vmem>>, %arg2: memref<128x128xbf16, #tpu.memory_space<vmem>>, %arg3: memref<128x128xbf16, #tpu.memory_space<vmem>>, %arg4: memref<8x128xf32, #tpu.memory_space<vmem>>) attributes {dimension_semantics = [], scalar_prefetch = 0 : i64, scratch_operands = 0 : i64, tpu.core_type = #tpu.core_type<tc>} {
    %c0 = arith.constant 0 : index
    %c0_0 = arith.constant 0 : index
    %0 = vector.load %arg0[%c0, %c0_0] : memref<8x128xf32, #tpu.memory_space<vmem>>, vector<8x128xf32>
    %1 = arith.truncf %0 : vector<8x128xf32> to vector<8x128xbf16>
    %c0_1 = arith.constant 0 : index
    %c0_2 = arith.constant 0 : index
    %2 = vector.load %arg1[%c0_1, %c0_2] : memref<128x128xbf16, #tpu.memory_space<vmem>>, vector<128x128xbf16>
    %cst = arith.constant dense<0.000000e+00> : vector<8x128xf32>
    %3 = tpu.matmul %1, %2, %cst {dimension_numbers = #tpu.dot_dimension_numbers<[1], [0], [0], [1], [0, 0, 1, 1], [], []>} : vector<8x128xbf16>, vector<128x128xbf16>, vector<8x128xf32> -> vector<8x128xf32>
    %cst_3 = arith.constant 0.000000e+00 : f32
    %4 = vector.broadcast %cst_3 : f32 to vector<8x128xf32>
    %5 = arith.maximumf %3, %4 : vector<8x128xf32>
    %6 = arith.truncf %5 : vector<8x128xf32> to vector<8x128xbf16>
    %c0_4 = arith.constant 0 : index
    %c0_5 = arith.constant 0 : index
    %7 = vector.load %arg2[%c0_4, %c0_5] : memref<128x128xbf16, #tpu.memory_space<vmem>>, vector<128x128xbf16>
    %cst_6 = arith.constant dense<0.000000e+00> : vector<8x128xf32>
    %8 = tpu.matmul %6, %7, %cst_6 {dimension_numbers = #tpu.dot_dimension_numbers<[1], [0], [0], [1], [0, 0, 1, 1], [], []>} : vector<8x128xbf16>, vector<128x128xbf16>, vector<8x128xf32> -> vector<8x128xf32>
    %cst_7 = arith.constant 0.000000e+00 : f32
    %9 = vector.broadcast %cst_7 : f32 to vector<8x128xf32>
    %10 = arith.maximumf %8, %9 : vector<8x128xf32>
    %11 = arith.truncf %10 : vector<8x128xf32> to vector<8x128xbf16>
    %c0_8 = arith.constant 0 : index
    %c0_9 = arith.constant 0 : index
    %12 = vector.load %arg3[%c0_8, %c0_9] : memref<128x128xbf16, #tpu.memory_space<vmem>>, vector<128x128xbf16>
    %cst_10 = arith.constant dense<0.000000e+00> : vector<8x128xf32>
    %13 = tpu.matmul %11, %12, %cst_10 {dimension_numbers = #tpu.dot_dimension_numbers<[1], [0], [0], [1], [0, 0, 1, 1], [], []>} : vector<8x128xbf16>, vector<128x128xbf16>, vector<8x128xf32> -> vector<8x128xf32>
    %c0_11 = arith.constant 0 : index
    %c0_12 = arith.constant 0 : index
    %14 = vector.load %arg4[%c0_11, %c0_12] : memref<8x128xf32, #tpu.memory_space<vmem>>, vector<8x128xf32>
    tpu.vector_store %arg4[%c0_11, %c0_12], %13 {strides = array<i32>} : memref<8x128xf32, #tpu.memory_space<vmem>>, vector<8x128xf32>,
    return
  }
}

</mosaic_0001>

<bundles_post_ra>
// kernel: _forward.1
= control target key start
LH: loop header
LB: loop body
LE: loop exit
PB: predicated region body
PF: predicated region fallthrough
CT: control target
= control target key end

     0   :  { %9 = vsyncpa [#allocation3], 0  ;;  %s667_s0 = inlined_call_operand.vmem [shape: f32[8,128], index: 0, kind: input, shape index: {}]   ;;  %s668_s1 = inlined_call_operand.hbm [shape: bf16[128,128], index: 1, kind: input, shape index: {}]   ;;  %s669_s2 = inlined_call_operand.hbm [shape: bf16[128,128], index: 2, kind: input, shape index: {}]   ;;  %s670_s3 = inlined_call_operand.hbm [shape: bf16[128,128], index: 3, kind: input, shape index: {}]   ;;  %s671_s4 = inlined_call_operand.vmem [shape: f32[8,128], index: 4, kind: output, shape index: {}]  }
   0x1   :  { %10 = vsyncpa [#allocation5], 0  ;;  %s590_s15 = smov [#allocation4]   ;;  %s591_s17 = smov [#allocation2]  }
   0x2   :  { %s30_s16 = sshll.u32 %s590_s15, 4  ;;  %s18_s18 = sshll.u32 %s591_s17, 4  ;;  %s31_s16 = int_to_ptr.vmem [resolvable:$true] %s30_s16  ;;  %s19_s18 = int_to_ptr.vmem [resolvable:$true] %s18_s18 }
   0x3   :  { %s534_s19 = scalar_lea.vmem %s31_s16, 1024  ;;  %p539_p1 = scmp.lt.s32.totalorder %s31_s16, %s31_s16 }
   0x4   :  { %p535_p0 = scmp.ne.s32.totalorder %s31_s16, %s534_s19  ;;  %p540_p2 = scmp.lt.s32.totalorder %s534_s19, %s534_s19 }
   0x6   :  { %p541_p3 = por %p540_p2, %p539_p1 }
   0x8   :  { %p542_p4 = pnand %p541_p3, %p535_p0 }
   0xa   :  { %545 = shalt.err (!%p542_p4)
}
   0xb   :  { %s592_s20 = smov 64   ;;  %s593_s21 = smov 4  }
   0xc   :  { %36 = dma.hbm_to_vmem [thread:$0]  %s669_s2, 1024, %s31_s16, [#allocation5], %s592_s20, %s592_s20, %s593_s21  }
   0xd   :  { %s554_s24 = scalar_lea.vmem %s19_s18, 1024  ;;  %p559_p6 = scmp.lt.s32.totalorder %s19_s18, %s19_s18 }
   0xe   :  { %p555_p5 = scmp.ne.s32.totalorder %s19_s18, %s554_s24  ;;  %p560_p7 = scmp.lt.s32.totalorder %s554_s24, %s554_s24 }
  0x10   :  { %p561_p8 = por %p560_p7, %p559_p6 }
  0x12   :  { %p562_p9 = pnand %p561_p8, %p555_p5 }
  0x14   :  { %565 = shalt.err (!%p562_p9)
}
  0x15   :  { %24 = dma.hbm_to_vmem [thread:$0]  %s668_s1, 1024, %s19_s18, [#allocation3], %s592_s20, %s592_s20, %s593_s21  }
  0x16   :  { %s594_s27 = smov [#allocation6]  }
  0x17   :  { %s42_s28 = sshll.u32 %s594_s27, 4  ;;  %s43_s28 = int_to_ptr.vmem [resolvable:$true] %s42_s28 }
  0x18   :  { %s574_s29 = scalar_lea.vmem %s43_s28, 1024  ;;  %p579_p11 = scmp.lt.s32.totalorder %s43_s28, %s43_s28 }
  0x19   :  { %p575_p10 = scmp.ne.s32.totalorder %s43_s28, %s574_s29  ;;  %p580_p12 = scmp.lt.s32.totalorder %s574_s29, %s574_s29 }
  0x1b   :  { %p581_p13 = por %p580_p12, %p579_p11 }
  0x1d   :  { %p582_p0 = pnand %p581_p13, %p575_p10 }
  0x1f   :  { %585 = shalt.err (!%p582_p0)
}
  0x20   :  { %48 = dma.hbm_to_vmem [thread:$0]  %s670_s3, 1024, %s43_s28, [#allocation5], %s592_s20, %s592_s20, %s593_s21  }
  0x21   :  { %586 = dma.done.wait [#allocation3], 1024  }
  0x22   :  { %587 = vsyncadd [#allocation3], 4294966272 }
  0x23   :  { %588 = dma.done.wait [#allocation5], 2048  }
  0x24   :  { %589 = vsyncadd [#allocation5], 4294965248  ;;  %v595_v0 = vmov 0.0   ;;  %vm596_vm0 = vmmov 0   ;;  %v502_v1 = vld [vmem:[#allocation2 + $0x38] sm:$0xff]   ;;  %v503_v2 = vld [vmem:[#allocation2 + $0x30] sm:$0xff]  }
  0x25   :  { %435 = vmatprep.subr.bf16.mxu0 %v595_v0  ;;  %451 = vmatprep.mubr.msk.bf16.mxu0 %vm596_vm0, %v595_v0  ;;  %v504_v3 = vld [vmem:[#allocation2 + $0x28] sm:$0xff]   ;;  %v510_v4 = vld [vmem:[#allocation4 + $0x38] sm:$0xff]   ;;  %v505_v5 = vld [vmem:[#allocation2 + $0x20] sm:$0xff]  }
  0x26   :  { %455 = vmatprep.subr.bf16.mxu1 %v595_v0  ;;  %471 = vmatprep.mubr.msk.bf16.mxu1 %vm596_vm0, %v595_v0  ;;  %v511_v6 = vld [vmem:[#allocation4 + $0x30] sm:$0xff]   ;;  %v506_v7 = vld [vmem:[#allocation2 + $0x18] sm:$0xff]   ;;  %v512_v8 = vld [vmem:[#allocation4 + $0x28] sm:$0xff]  }
  0x27   :  { %436 = vmatpush3.bf16.msra.mxu0 %v502_v1  ;;  %456 = vmatpush3.bf16.msra.mxu1 %v510_v4  ;;  %v507_v9 = vld [vmem:[#allocation2 + $0x10] sm:$0xff]   ;;  %v513_v10 = vld [vmem:[#allocation4 + $0x20] sm:$0xff]   ;;  %v508_v11 = vld [vmem:[#allocation2 + $0x8] sm:$0xff]  }
  0x28   :  { %437 = vmatprep.subr.bf16.mxu0 %v595_v0  ;;  %457 = vmatprep.subr.bf16.mxu1 %v595_v0  ;;  %v514_v12 = vld [vmem:[#allocation4 + $0x18] sm:$0xff]   ;;  %v509_v13 = vld [vmem:[#allocation2] sm:$0xff]   ;;  %v515_v15 = vld [vmem:[#allocation4 + $0x10] sm:$0xff]  }
  0x29   :  { %v59_v14 = vld [vmem:[%s667_s0] sm:$0xff]  ;;  %v516_v17 = vld [vmem:[#allocation4 + $0x8] sm:$0xff]   ;;  %v518_v19 = vld [vmem:[#allocation6 + $0x38] sm:$0xff]  }
  0x2a   :  { %v60_v16 = vpack.c.bf16 %v59_v14, %v59_v14  ;;  %v517_v18 = vld [vmem:[#allocation4] sm:$0xff]   ;;  %v519_v20 = vld [vmem:[#allocation6 + $0x30] sm:$0xff]   ;;  %v520_v21 = vld [vmem:[#allocation6 + $0x28] sm:$0xff]  }
  0x2b   :  { %438 = vmatpush3.bf16.msra.mxu0 %v503_v2  ;;  %458 = vmatpush3.bf16.msra.mxu1 %v511_v6  ;;  %v521_v22 = vld [vmem:[#allocation6 + $0x20] sm:$0xff]   ;;  %v522_v23 = vld [vmem:[#allocation6 + $0x18] sm:$0xff]   ;;  %v523_v24 = vld [vmem:[#allocation6 + $0x10] sm:$0xff]  }
  0x2c   :  { %439 = vmatprep.subr.bf16.mxu0 %v595_v0  ;;  %459 = vmatprep.subr.bf16.mxu1 %v595_v0  ;;  %v524_v25 = vld [vmem:[#allocation6 + $0x8] sm:$0xff]   ;;  %v525_v32 = vld [vmem:[#allocation6] sm:$0xff]  }
  0x2f   :  { %440 = vmatpush3.bf16.msra.mxu0 %v504_v3  ;;  %460 = vmatpush3.bf16.msra.mxu1 %v512_v8 }
  0x30   :  { %441 = vmatprep.subr.bf16.mxu0 %v595_v0  ;;  %461 = vmatprep.subr.bf16.mxu1 %v595_v0 }
  0x33   :  { %442 = vmatpush3.bf16.msra.mxu0 %v505_v5  ;;  %462 = vmatpush3.bf16.msra.mxu1 %v513_v10 }
  0x34   :  { %443 = vmatprep.subr.bf16.mxu0 %v595_v0  ;;  %463 = vmatprep.subr.bf16.mxu1 %v595_v0 }
  0x37   :  { %444 = vmatpush3.bf16.msra.mxu0 %v506_v7  ;;  %464 = vmatpush3.bf16.msra.mxu1 %v514_v12 }
  0x38   :  { %445 = vmatprep.subr.bf16.mxu0 %v595_v0  ;;  %465 = vmatprep.subr.bf16.mxu1 %v595_v0 }
  0x3b   :  { %446 = vmatpush3.bf16.msra.mxu0 %v507_v9  ;;  %466 = vmatpush3.bf16.msra.mxu1 %v515_v15 }
  0x3c   :  { %447 = vmatprep.subr.bf16.mxu0 %v595_v0  ;;  %467 = vmatprep.subr.bf16.mxu1 %v595_v0 }
  0x3f   :  { %448 = vmatpush3.bf16.msra.mxu0 %v508_v11  ;;  %468 = vmatpush3.bf16.msra.mxu1 %v516_v17 }
  0x40   :  { %449 = vmatprep.subr.bf16.mxu0 %v595_v0  ;;  %469 = vmatprep.subr.bf16.mxu1 %v595_v0 }
  0x43   :  { %450 = vmatpush3.bf16.msra.mxu0 %v509_v13  ;;  %470 = vmatpush3.bf16.msra.mxu1 %v517_v18 }
  0x44   :  { %475 = vmatprep.subr.bf16.mxu0 %v595_v0 }
  0x46   :  { %452 = vmatmul.mubr.bf16.vlgmr.msra.gmra.mxu0 %v60_v16 }
  0x47   :  { %491 = vmatprep.mubr.msk.bf16.mxu0 %vm596_vm0, %v595_v0  ;;  %476 = vmatpush3.bf16.msra.mxu0 %v518_v19 }
  0x48   :  { %477 = vmatprep.subr.bf16.mxu0 %v595_v0 }
  0x4b   :  { %478 = vmatpush3.bf16.msra.mxu0 %v519_v20 }
  0x4c   :  { %479 = vmatprep.subr.bf16.mxu0 %v595_v0 }
  0x4f   :  { %480 = vmatpush3.bf16.msra.mxu0 %v520_v21 }
  0x50   :  { %481 = vmatprep.subr.bf16.mxu0 %v595_v0 }
  0x53   :  { %482 = vmatpush3.bf16.msra.mxu0 %v521_v22 }
  0x54   :  { %483 = vmatprep.subr.bf16.mxu0 %v595_v0 }
  0x57   :  { %484 = vmatpush3.bf16.msra.mxu0 %v522_v23 }
  0x58   :  { %485 = vmatprep.subr.bf16.mxu0 %v595_v0 }
  0x5b   :  { %486 = vmatpush3.bf16.msra.mxu0 %v523_v24 }
  0x5c   :  { %487 = vmatprep.subr.bf16.mxu0 %v595_v0 }
  0x5f   :  { %488 = vmatpush3.bf16.msra.mxu0 %v524_v25 }
  0x60   :  { %489 = vmatprep.subr.bf16.mxu0 %v595_v0 }
  0x63   :  { %490 = vmatpush3.bf16.msra.mxu0 %v525_v32 }
 0x106   :  { %v159_v26 = vpop.f32.mrf.mxu0 }
 0x107   :  { %v165_v27 = vmax.f32 %v159_v26, 0.0 }
 0x108   :  { %v453_v28 = vpop.f32.mrf.mxu0 }
 0x109   :  { %v166_v29 = vpack.c.bf16 %v165_v27, %v165_v27 }
 0x10a   :  { %v162_v30 = vpop.f32.mrf.mxu0 }
 0x10b   :  { %472 = vmatmul.mubr.bf16.vlgmr.msra.gmra.mxu1 %v166_v29 }
 0x10c   :  { %v454_v31 = vpop.f32.mrf.mxu0 }
 0x1cb   :  { %v265_v33 = vpop.f32.mrf.mxu1 }
 0x1cc   :  { %v271_v34 = vmax.f32 %v265_v33, 0.0 }
 0x1cd   :  { %v473_v35 = vpop.f32.mrf.mxu1 }
 0x1ce   :  { %v272_v36 = vpack.c.bf16 %v271_v34, %v271_v34 }
 0x1cf   :  { %v268_v37 = vpop.f32.mrf.mxu1 }
 0x1d0   :  { %492 = vmatmul.mubr.bf16.vlgmr.msra.gmra.mxu0 %v272_v36 }
 0x1d1   :  { %v474_v38 = vpop.f32.mrf.mxu1 }
 0x290   :  { %v371_v39 = vpop.f32.mrf.mxu0 }
 0x291   :  { %377 = vst [vmem:[%s671_s4] sm:$0xff] %v371_v39 }
 0x292   :  { %v493_v40 = vpop.f32.mrf.mxu0 }
 0x294   :  { %v374_v41 = vpop.f32.mrf.mxu0 }
 0x296   :  { %v494_v42 = vpop.f32.mrf.mxu0 }
 0x297   :  { %382 = vsyncpa [#allocation3], 1 }
 0x298   :  { %383 = vsyncpa [#allocation5], 1 }

</bundles_post_ra>
